<compile_context>
chip_gen: v6e
topology: v6e:2x2x1
jax: 0.10.0
libtpu: 0.0.40
codegen_flags: <defaults>
</compile_context>

<pallas_src>
import math

import jax
import jax.numpy as jnp
from jax.experimental import pallas as pl
from jax.experimental.pallas import tpu as pltpu

_MIB = 1024 * 1024


def _vmem_budget_bytes():
    """Generation-aware (double-buffered) working-set budget and VMEM capacity."""
    cap = 128 * _MIB
    try:
        info = pltpu.get_tpu_info()
        cap = int(getattr(info, "vmem_capacity_bytes", cap) or cap)
    except Exception:
        pass
    # ~3/8 of physical VMEM: 48 MiB on v5e/v6e (128 MiB), 24 MiB on v7x (64 MiB).
    budget = int(min(max(cap * 3 // 8, 16 * _MIB), 48 * _MIB))
    return budget, cap


def _vmem_limit(budget, vmem_cap, block_set_bytes):
    """Scoped-VMEM limit: budget (or actual working set) plus headroom, capped."""
    need = max(budget, 2 * block_set_bytes + 8 * _MIB)
    return int(min(need * 5 // 4, vmem_cap * 3 // 4))


def _dma_concat(xs, channels, out_dtype, L, R, total_bytes):
    """Same-dtype fast path: strided HBM->HBM DMA per input, no VMEM staging."""
    n = len(xs)
    widths = [c * R for c in channels]
    w_out = sum(widths)
    flat = [x.reshape(L, w) for x, w in zip(xs, widths)]

    def kernel(*refs):
        in_refs = refs[:n]
        o_ref = refs[n]
        sem = refs[n + 1]
        copies = []
        off = 0
        for i, (r, w) in enumerate(zip(in_refs, widths)):
            cp = pltpu.make_async_copy(r, o_ref.at[:, pl.ds(off, w)], sem.at[i])
            cp.start()
            copies.append(cp)
            off += w
        for cp in copies:
            cp.wait()

    return pl.pallas_call(
        kernel,
        out_shape=jax.ShapeDtypeStruct((L, w_out), out_dtype),
        in_specs=[pl.BlockSpec(memory_space=pl.ANY)] * n,
        out_specs=pl.BlockSpec(memory_space=pl.ANY),
        scratch_shapes=[pltpu.SemaphoreType.DMA((n,))],
        cost_estimate=pl.CostEstimate(
            flops=0, transcendentals=0, bytes_accessed=int(total_bytes)),
    )(*flat)


def _staged_concat_3d(xs, channels, out_dtype, L, C_tot, R,
                      budget, vmem_cap, total_bytes):
    """Staged path with 3-D (rows, channels, trailing) blocks; grid over (L, R)."""
    n = len(xs)
    out_isize = jnp.dtype(out_dtype).itemsize
    views = [x.reshape(L, c, R) for x, c in zip(xs, channels)]

    step_target = max(2 * _MIB, budget // 4)
    per_lr = (sum(c * x.dtype.itemsize for c, x in zip(channels, xs))
              + C_tot * out_isize)
    max_lr = max(1, step_target // per_lr)

    if R <= max_lr:
        tr = R                                   # full trailing extent (always legal)
    else:
        tr = max(128, (max_lr // 128) * 128)     # lane-aligned tile of R
    tl = max(1, min(L, max_lr // tr))

    grid = (pl.cdiv(L, tl), pl.cdiv(R, tr))

    def kernel(*refs):
        in_refs = refs[:n]
        o_ref = refs[n]
        off = 0
        for r, c in zip(in_refs, channels):
            o_ref[:, off:off + c, :] = r[...].astype(o_ref.dtype)
            off += c

    in_specs = [pl.BlockSpec((tl, c, tr), lambda i, j: (i, 0, j)) for c in channels]
    out_spec = pl.BlockSpec((tl, C_tot, tr), lambda i, j: (i, 0, j))

    return pl.pallas_call(
        kernel,
        out_shape=jax.ShapeDtypeStruct((L, C_tot, R), out_dtype),
        grid=grid,
        in_specs=in_specs,
        out_specs=out_spec,
        compiler_params=pltpu.CompilerParams(
            dimension_semantics=("parallel", "parallel"),
            vmem_limit_bytes=_vmem_limit(budget, vmem_cap, tl * tr * per_lr),
        ),
        cost_estimate=pl.CostEstimate(
            flops=0, transcendentals=0, bytes_accessed=int(total_bytes)),
    )(*views)


def _staged_concat_2d(xs, channels, out_dtype, L, C_tot, R,
                      budget, vmem_cap, total_bytes):
    """Fallback for small trailing extents (R < 128): flatten to (L, C_i*R) and
    tile rows.  Column stores may be lane-masked; correctness is unaffected."""
    n = len(xs)
    out_isize = jnp.dtype(out_dtype).itemsize
    widths = [c * R for c in channels]
    w_out = C_tot * R
    flat = [x.reshape(L, w) for x, w in zip(xs, widths)]

    # dtype-aware sublane packing quantum for the row tile (8 f32 / 16 bf16 / 32 int8)
    sub_mult = max([32 // out_isize] + [32 // x.dtype.itemsize for x in xs])

    step_target = max(2 * _MIB, budget // 4)
    per_row = (sum(w * x.dtype.itemsize for w, x in zip(widths, xs))
               + w_out * out_isize)
    tl = max(1, min(L, step_target // per_row))
    if tl < L:
        tl = min(max(sub_mult, (tl // sub_mult) * sub_mult), L)
        if tl < sub_mult:       # leading extent smaller than the packing quantum
            tl = L              # full extent is always a legal block dim

    grid = (pl.cdiv(L, tl),)

    def kernel(*refs):
        in_refs = refs[:n]
        o_ref = refs[n]
        off = 0
        for r, w in zip(in_refs, widths):
            o_ref[:, off:off + w] = r[...].astype(o_ref.dtype)
            off += w

    in_specs = [pl.BlockSpec((tl, w), lambda i: (i, 0)) for w in widths]
    out_spec = pl.BlockSpec((tl, w_out), lambda i: (i, 0))

    return pl.pallas_call(
        kernel,
        out_shape=jax.ShapeDtypeStruct((L, w_out), out_dtype),
        grid=grid,
        in_specs=in_specs,
        out_specs=out_spec,
        compiler_params=pltpu.CompilerParams(
            dimension_semantics=("parallel",),
            vmem_limit_bytes=_vmem_limit(budget, vmem_cap, tl * per_row),
        ),
        cost_estimate=pl.CostEstimate(
            flops=0, transcendentals=0, bytes_accessed=int(total_bytes)),
    )(*flat)


def concatenate(*inputs, dim: int = 1, min_pallas_bytes: int = _MIB):
    """Pallas equivalent of torch.cat(inputs, dim=dim)."""
    assert len(inputs) >= 1, "concatenate needs at least one input"
    ndim = inputs[0].ndim
    dim = dim % ndim

    out_dtype = jnp.result_type(*[x.dtype for x in inputs])
    out_shape = list(inputs[0].shape)
    out_shape[dim] = sum(int(x.shape[dim]) for x in inputs)
    out_shape = tuple(out_shape)

    # Drop size-0 contributions along `dim`.
    xs = [x for x in inputs if int(x.shape[dim]) > 0]

    L = math.prod(out_shape[:dim])
    R = math.prod(out_shape[dim + 1:])
    C_tot = out_shape[dim]

    if not xs or L == 0 or R == 0 or C_tot == 0:
        return jnp.zeros(out_shape, out_dtype)

    for x in xs:  # torch.cat contract: all non-`dim` extents must match
        assert x.ndim == ndim
        assert x.shape[:dim] == out_shape[:dim]
        assert x.shape[dim + 1:] == out_shape[dim + 1:]

    if len(xs) == 1:
        return xs[0].astype(out_dtype).reshape(out_shape)

    out_isize = jnp.dtype(out_dtype).itemsize
    total_bytes = (sum(x.size * x.dtype.itemsize for x in xs)
                   + L * C_tot * R * out_isize)

    # Tiny concats: pallas_call launch + pipeline prologue dominates; XLA's
    # native concat is already at roofline there.
    if total_bytes < min_pallas_bytes:
        return jnp.concatenate([x.astype(out_dtype) for x in xs], axis=dim)

    channels = [int(x.shape[dim]) for x in xs]
    budget, vmem_cap = _vmem_budget_bytes()

    same_dtype = all(x.dtype == out_dtype for x in xs)
    min_chunk_bytes = min(c * R * x.dtype.itemsize for c, x in zip(channels, xs))

    if same_dtype and min_chunk_bytes >= 512:
        out2d = _dma_concat(xs, channels, out_dtype, L, R, total_bytes)
    elif R >= 128:
        out2d = _staged_concat_3d(xs, channels, out_dtype, L, C_tot, R,
                                  budget, vmem_cap, total_bytes)
    else:
        # TODO(synk): pathological (huge-row, small-R) shapes still only tile rows here.
        out2d = _staged_concat_2d(xs, channels, out_dtype, L, C_tot, R,
                                  budget, vmem_cap, total_bytes)
    return out2d.reshape(out_shape)


if __name__ == "__main__":
    key = jax.random.PRNGKey(0)
    k1, k2, k3, k4, k5 = jax.random.split(key, 5)

    # 1) Same-dtype NCHW concat along dim=1 -> HBM->HBM DMA fast path.
    x1 = jax.random.normal(k1, (2, 4, 16, 16), dtype=jnp.float32)
    x2 = jax.random.normal(k2, (2, 6, 16, 16), dtype=jnp.float32)
    x3 = jax.random.normal(k3, (2, 2, 16, 16), dtype=jnp.float32)
    out = jax.block_until_ready(concatenate(x1, x2, x3, dim=1, min_pallas_bytes=0))
    ref = jnp.concatenate([x1, x2, x3], axis=1)
    assert out.shape == (2, 12, 16, 16), out.shape
    assert jnp.array_equal(out, ref), "mismatch vs jnp.concatenate (DMA path)"

    # 2) Mixed dtype (cast on store) -> staged 3-D (L, C, R) pipelined path.
    x4 = jax.random.normal(k4, (2, 3, 16, 16), dtype=jnp.bfloat16)
    out2 = jax.block_until_ready(concatenate(x1, x4, dim=1, min_pallas_bytes=0))
    ref2 = jnp.concatenate([x1, x4.astype(jnp.float32)], axis=1)
    assert out2.dtype == jnp.float32
    assert jnp.array_equal(out2, ref2), "mismatch vs reference (staged 3-D path)"

    # 3) Concat along the last dim (R == 1, tiny chunks) -> staged 2-D fallback.
    x5 = jax.random.normal(k5, (2, 4, 16, 16), dtype=jnp.float32)
    out3 = jax.block_until_ready(concatenate(x1, x5, dim=3, min_pallas_bytes=0))
    ref3 = jnp.concatenate([x1, x5], axis=3)
    assert out3.shape == (2, 4, 16, 32), out3.shape
    assert jnp.array_equal(out3, ref3), "mismatch vs reference (staged 2-D path)"

    # 4) Default small-size dispatch (jnp.concatenate) still matches.
    out4 = jax.block_until_ready(concatenate(x1, x2, x3, dim=1))
    assert jnp.array_equal(out4, ref), "mismatch vs reference (small-size dispatch)"

    print("KERNEL_OK")
</pallas_src>

<mosaic_0001>
module attributes {stable_mosaic.version = 11 : i64} {
  func.func @kernel(%arg0: memref<2x1024xf32, #tpu.memory_space<any>>, %arg1: memref<2x1536xf32, #tpu.memory_space<any>>, %arg2: memref<2x512xf32, #tpu.memory_space<any>>, %arg3: memref<2x3072xf32, #tpu.memory_space<any>>, %arg4: memref<3x!tpu.dma_semaphore, #tpu.memory_space<semaphore_mem>>) attributes {dimension_semantics = [], scalar_prefetch = 0 : i64, scratch_operands = 1 : i64, tpu.core_type = #tpu.core_type<tc>} {
    %c0_i32 = arith.constant 0 : i32
    %c0_i32_0 = arith.constant 0 : i32
    %c0_i32_1 = arith.constant 0 : i32
    %0 = tpu.memref_slice %arg3[%c0_i32_0, %c0_i32_1] : memref<2x3072xf32, #tpu.memory_space<any>> -> memref<2x1024xf32, #tpu.memory_space<any>>
    %1 = tpu.memref_slice %arg4[%c0_i32] : memref<3x!tpu.dma_semaphore, #tpu.memory_space<semaphore_mem>> -> memref<1x!tpu.dma_semaphore, #tpu.memory_space<semaphore_mem>>
    %2 = tpu.memref_squeeze %1 : memref<1x!tpu.dma_semaphore, #tpu.memory_space<semaphore_mem>> -> memref<!tpu.dma_semaphore, #tpu.memory_space<semaphore_mem>>
    tpu.enqueue_dma source(%arg0 : memref<2x1024xf32, #tpu.memory_space<any>>) target(%0 : memref<2x1024xf32, #tpu.memory_space<any>>) target_semaphore(%2 : memref<!tpu.dma_semaphore, #tpu.memory_space<semaphore_mem>>)
    %c1_i32 = arith.constant 1 : i32
    %c0_i32_2 = arith.constant 0 : i32
    %c1024_i32 = arith.constant 1024 : i32
    %3 = tpu.memref_slice %arg3[%c0_i32_2, %c1024_i32] : memref<2x3072xf32, #tpu.memory_space<any>> -> memref<2x1536xf32, #tpu.memory_space<any>>
    %4 = tpu.memref_slice %arg4[%c1_i32] : memref<3x!tpu.dma_semaphore, #tpu.memory_space<semaphore_mem>> -> memref<1x!tpu.dma_semaphore, #tpu.memory_space<semaphore_mem>>
    %5 = tpu.memref_squeeze %4 : memref<1x!tpu.dma_semaphore, #tpu.memory_space<semaphore_mem>> -> memref<!tpu.dma_semaphore, #tpu.memory_space<semaphore_mem>>
    tpu.enqueue_dma source(%arg1 : memref<2x1536xf32, #tpu.memory_space<any>>) target(%3 : memref<2x1536xf32, #tpu.memory_space<any>>) target_semaphore(%5 : memref<!tpu.dma_semaphore, #tpu.memory_space<semaphore_mem>>)
    %c2_i32 = arith.constant 2 : i32
    %c0_i32_3 = arith.constant 0 : i32
    %c2560_i32 = arith.constant 2560 : i32
    %6 = tpu.memref_slice %arg3[%c0_i32_3, %c2560_i32] : memref<2x3072xf32, #tpu.memory_space<any>> -> memref<2x512xf32, #tpu.memory_space<any>>
    %7 = tpu.memref_slice %arg4[%c2_i32] : memref<3x!tpu.dma_semaphore, #tpu.memory_space<semaphore_mem>> -> memref<1x!tpu.dma_semaphore, #tpu.memory_space<semaphore_mem>>
    %8 = tpu.memref_squeeze %7 : memref<1x!tpu.dma_semaphore, #tpu.memory_space<semaphore_mem>> -> memref<!tpu.dma_semaphore, #tpu.memory_space<semaphore_mem>>
    tpu.enqueue_dma source(%arg2 : memref<2x512xf32, #tpu.memory_space<any>>) target(%6 : memref<2x512xf32, #tpu.memory_space<any>>) target_semaphore(%8 : memref<!tpu.dma_semaphore, #tpu.memory_space<semaphore_mem>>)
    %c0_i32_4 = arith.constant 0 : i32
    %c0_i32_5 = arith.constant 0 : i32
    %c0_i32_6 = arith.constant 0 : i32
    %9 = tpu.memref_slice %arg3[%c0_i32_5, %c0_i32_6] : memref<2x3072xf32, #tpu.memory_space<any>> -> memref<2x1024xf32, #tpu.memory_space<any>>
    %10 = tpu.memref_slice %arg4[%c0_i32_4] : memref<3x!tpu.dma_semaphore, #tpu.memory_space<semaphore_mem>> -> memref<1x!tpu.dma_semaphore, #tpu.memory_space<semaphore_mem>>
    %11 = tpu.memref_squeeze %10 : memref<1x!tpu.dma_semaphore, #tpu.memory_space<semaphore_mem>> -> memref<!tpu.dma_semaphore, #tpu.memory_space<semaphore_mem>>
    tpu.wait_dma2 semaphore(%11 : memref<!tpu.dma_semaphore, #tpu.memory_space<semaphore_mem>>) src(%arg0 : memref<2x1024xf32, #tpu.memory_space<any>>) dst(%9 : memref<2x1024xf32, #tpu.memory_space<any>>)
    %c1_i32_7 = arith.constant 1 : i32
    %c0_i32_8 = arith.constant 0 : i32
    %c1024_i32_9 = arith.constant 1024 : i32
    %12 = tpu.memref_slice %arg3[%c0_i32_8, %c1024_i32_9] : memref<2x3072xf32, #tpu.memory_space<any>> -> memref<2x1536xf32, #tpu.memory_space<any>>
    %13 = tpu.memref_slice %arg4[%c1_i32_7] : memref<3x!tpu.dma_semaphore, #tpu.memory_space<semaphore_mem>> -> memref<1x!tpu.dma_semaphore, #tpu.memory_space<semaphore_mem>>
    %14 = tpu.memref_squeeze %13 : memref<1x!tpu.dma_semaphore, #tpu.memory_space<semaphore_mem>> -> memref<!tpu.dma_semaphore, #tpu.memory_space<semaphore_mem>>
    tpu.wait_dma2 semaphore(%14 : memref<!tpu.dma_semaphore, #tpu.memory_space<semaphore_mem>>) src(%arg1 : memref<2x1536xf32, #tpu.memory_space<any>>) dst(%12 : memref<2x1536xf32, #tpu.memory_space<any>>)
    %c2_i32_10 = arith.constant 2 : i32
    %c0_i32_11 = arith.constant 0 : i32
    %c2560_i32_12 = arith.constant 2560 : i32
    %15 = tpu.memref_slice %arg3[%c0_i32_11, %c2560_i32_12] : memref<2x3072xf32, #tpu.memory_space<any>> -> memref<2x512xf32, #tpu.memory_space<any>>
    %16 = tpu.memref_slice %arg4[%c2_i32_10] : memref<3x!tpu.dma_semaphore, #tpu.memory_space<semaphore_mem>> -> memref<1x!tpu.dma_semaphore, #tpu.memory_space<semaphore_mem>>
    %17 = tpu.memref_squeeze %16 : memref<1x!tpu.dma_semaphore, #tpu.memory_space<semaphore_mem>> -> memref<!tpu.dma_semaphore, #tpu.memory_space<semaphore_mem>>
    tpu.wait_dma2 semaphore(%17 : memref<!tpu.dma_semaphore, #tpu.memory_space<semaphore_mem>>) src(%arg2 : memref<2x512xf32, #tpu.memory_space<any>>) dst(%15 : memref<2x512xf32, #tpu.memory_space<any>>)
    return
  }
}

</mosaic_0001>

<bundles_post_ra>
// kernel: tpu_custom_call.1
= control target key start
LH: loop header
LB: loop body
LE: loop exit
PB: predicated region body
PF: predicated region fallthrough
CT: control target
= control target key end

     0   :  { %s77_s15 = smov [#allocation2]   ;;  %s78_s16 = smov 131072   ;;  %s120_s0 = inlined_call_operand.hbm [shape: f32[2,1024], index: 0, kind: input, shape index: {}]   ;;  %s121_s3 = inlined_call_operand.hbm [shape: f32[2,3072], index: 3, kind: output, shape index: {}]   ;;  %s122_s1 = inlined_call_operand.hbm [shape: f32[2,1536], index: 1, kind: input, shape index: {}]   ;;  %s123_s2 = inlined_call_operand.hbm [shape: f32[2,512], index: 2, kind: input, shape index: {}]  }
   0x1   :  { %s15_s14 = scalar_lea.hbm %s121_s3, 256  ;;  %s79_s17 = smov 0  }
   0x2   :  { %14 = dma.general %s120_s0, 256, %s121_s3, %s77_s15, %s78_s16, [#allocation4], %s79_s17, 0  }
   0x3   :  { %s24_s24 = scalar_lea.hbm %s121_s3, 640  ;;  %s80_s25 = smov [#allocation2 + $0x1]  }
   0x4   :  { %23 = dma.general %s122_s1, 384, %s15_s14, %s80_s25, %s78_s16, [#allocation6], %s79_s17, 0  }
   0x5   :  { %s81_s28 = smov [#allocation2 + $0x2]  }
   0x6   :  { %32 = dma.general %s123_s2, 128, %s24_s24, %s81_s28, %s78_s16, [#allocation8], %s79_s17, 0  }
   0x7   :  { %71 = dma.done.wait [#allocation2], 256 }
   0x8   :  { %72 = vsyncadd [#allocation2], 4294967040 }
   0x9   :  { %73 = dma.done.wait [#allocation2 + $0x1], 384 }
   0xa   :  { %74 = vsyncadd [#allocation2 + $0x1], 4294966912 }
   0xb   :  { %75 = dma.done.wait [#allocation2 + $0x2], 128 }
   0xc   :  { %76 = vsyncadd [#allocation2 + $0x2], 4294967168 }
   0xd   :  { %43 = vsyncmov [#allocation2] }
  0x10   :  { %s44_s0 = vpop.sfrf %43 }
  0x11   :  { %p63_p0 = scmp.ne.s32.totalorder %s44_s0, 0 }
  0x13   :  { %48 = shalt.err (%p63_p0)  }
  0x14   :  { %50 = vsyncmov [#allocation2 + $0x1] }
  0x17   :  { %s51_s3 = vpop.sfrf %50 }
  0x18   :  { %p64_p1 = scmp.ne.s32.totalorder %s51_s3, 0 }
  0x1a   :  { %55 = shalt.err (%p64_p1)  }
  0x1b   :  { %57 = vsyncmov [#allocation2 + $0x2] }
  0x1e   :  { %s58_s1 = vpop.sfrf %57 }
  0x1f   :  { %p65_p2 = scmp.ne.s32.totalorder %s58_s1, 0 }
  0x21   :  { %62 = shalt.err (%p65_p2)  }

</bundles_post_ra>
